<compile_context>
chip_gen: v5e
topology: v5e:2x2
jax: 0.10.0
libtpu: 0.0.40
codegen_flags: <defaults>
</compile_context>

<pallas_src>
import functools
import math

import jax
import jax.numpy as jnp
from jax import lax
from jax.experimental import pallas as pl
from jax.experimental.pallas import tpu as pltpu


def _round_up(x, m):
    return (x + m - 1) // m * m


# ---------------------------------------------------------------------------
# Kernel 1: fused QKV linear projection  out = x @ W + b
# ---------------------------------------------------------------------------
def _linear_kernel(x_ref, w_ref, b_ref, o_ref):
    y = jnp.dot(x_ref[...], w_ref[...], preferred_element_type=jnp.float32)
    y = y + b_ref[...].astype(jnp.float32)
    o_ref[...] = y.astype(o_ref.dtype)


def _linear(x, w, b, *, tm_max=256, tn_max=512):
    """x: (M, H); w: (H, N) (torch weight.T, i.e. in/out layout); b: (N,)."""
    M, H = x.shape
    N = w.shape[1]

    TM = min(tm_max, _round_up(M, 8))
    M_pad = _round_up(M, TM)
    TN = min(tn_max, _round_up(N, 128))
    N_pad = _round_up(N, TN)

    if M_pad != M:
        x = jnp.pad(x, ((0, M_pad - M), (0, 0)))
    if N_pad != N:
        w = jnp.pad(w, ((0, 0), (0, N_pad - N)))
        b = jnp.pad(b, (0, N_pad - N))
    b2 = b.reshape(1, N_pad)

    # Outer axis = output columns, inner axis = rows -> the W tile is reused
    # across the whole M sweep (Pallas elides the repeated weight DMA).
    grid = (N_pad // TN, M_pad // TM)

    out = pl.pallas_call(
        _linear_kernel,
        out_shape=jax.ShapeDtypeStruct((M_pad, N_pad), x.dtype),
        grid=grid,
        in_specs=[
            pl.BlockSpec((TM, H), lambda j, i: (i, 0)),
            pl.BlockSpec((H, TN), lambda j, i: (0, j)),
            pl.BlockSpec((1, TN), lambda j, i: (0, j)),
        ],
        out_specs=pl.BlockSpec((TM, TN), lambda j, i: (i, j)),
        compiler_params=pltpu.CompilerParams(
            dimension_semantics=("parallel", "parallel"),
            vmem_limit_bytes=48 * 1024 * 1024,
        ),
    )(x, w, b2)

    return out[:M, :N]


# ---------------------------------------------------------------------------
# Kernel 2: scaled-dot-product attention with online softmax
# ---------------------------------------------------------------------------
def _attn_kernel(q_ref, k_ref, v_ref, mask_ref, o_ref,
                 m_sc, l_sc, acc_sc, *, scale):
    ki = pl.program_id(3)

    @pl.when(ki == 0)
    def _():
        m_sc[...] = jnp.full_like(m_sc, -jnp.inf)
        l_sc[...] = jnp.zeros_like(l_sc)
        acc_sc[...] = jnp.zeros_like(acc_sc)

    q = q_ref[0, 0]          # (TQ, D)
    k = k_ref[0, 0]          # (TK, D)
    v = v_ref[0, 0]          # (TK, D)
    msk = mask_ref[0]        # (1, TK) additive mask, broadcast over queries

    # scores = q @ k^T  (contract over head_dim), f32 accumulation on MXU.
    s = lax.dot_general(q, k, (((1,), (1,)), ((), ())),
                        preferred_element_type=jnp.float32)
    s = s * scale + msk.astype(jnp.float32)          # (TQ, TK)

    m_prev = m_sc[...]
    m_new = jnp.maximum(m_prev, s.max(axis=-1, keepdims=True))
    alpha = jnp.exp(m_prev - m_new)
    p = jnp.exp(s - m_new)

    l_sc[...] = alpha * l_sc[...] + p.sum(axis=-1, keepdims=True)
    acc_sc[...] = alpha * acc_sc[...] + jnp.dot(
        p.astype(v.dtype), v, preferred_element_type=jnp.float32)
    m_sc[...] = m_new

    @pl.when(ki == pl.num_programs(3) - 1)
    def _():
        o_ref[0, 0] = (acc_sc[...] / l_sc[...]).astype(o_ref.dtype)


def _attention(q, k, v, mask3, scale, *, tile_max=256):
    """q/k/v: (B, NH, S, D); mask3: (B, 1, S) additive. Returns (B, NH, S, D)."""
    B, NH, S, D = q.shape

    # Same tile size for q and kv so a single padded length works for both.
    TQ = TK = min(tile_max, _round_up(S, 8))
    S_pad = _round_up(S, TQ)

    pad_s = S_pad - S
    if pad_s:
        q = jnp.pad(q, ((0, 0), (0, 0), (0, pad_s), (0, 0)))
        k = jnp.pad(k, ((0, 0), (0, 0), (0, pad_s), (0, 0)))
        v = jnp.pad(v, ((0, 0), (0, 0), (0, pad_s), (0, 0)))
        mask3 = jnp.pad(mask3, ((0, 0), (0, 0), (0, pad_s)),
                        constant_values=-1e30)  # padded keys -> zero prob

    grid = (B, NH, S_pad // TQ, S_pad // TK)

    out = pl.pallas_call(
        functools.partial(_attn_kernel, scale=scale),
        out_shape=jax.ShapeDtypeStruct((B, NH, S_pad, D), q.dtype),
        grid=grid,
        in_specs=[
            pl.BlockSpec((1, 1, TQ, D), lambda b, h, qi, ki: (b, h, qi, 0)),
            pl.BlockSpec((1, 1, TK, D), lambda b, h, qi, ki: (b, h, ki, 0)),
            pl.BlockSpec((1, 1, TK, D), lambda b, h, qi, ki: (b, h, ki, 0)),
            pl.BlockSpec((1, 1, TK), lambda b, h, qi, ki: (b, 0, ki)),
        ],
        out_specs=pl.BlockSpec((1, 1, TQ, D),
                               lambda b, h, qi, ki: (b, h, qi, 0)),
        scratch_shapes=[
            pltpu.VMEM((TQ, 1), jnp.float32),   # running max
            pltpu.VMEM((TQ, 1), jnp.float32),   # running sum
            pltpu.VMEM((TQ, D), jnp.float32),   # output accumulator
        ],
        compiler_params=pltpu.CompilerParams(
            dimension_semantics=("parallel", "parallel", "parallel",
                                 "arbitrary"),
            vmem_limit_bytes=48 * 1024 * 1024,
        ),
    )(q, k, v, mask3)

    return out[:, :, :S, :]


# ---------------------------------------------------------------------------
# Full module wrapper
# ---------------------------------------------------------------------------
def bert_self_attention(hidden_states, attention_mask,
                        q_w, q_b, k_w, k_b, v_w, v_b,
                        num_attention_heads):
    """hidden_states: (B, S, H); attention_mask: (B, 1, 1, S) additive.
    q_w/k_w/v_w: (H, H) stored as torch weight.T (in, out); *_b: (H,).
    Returns the context layer (B, S, H)."""
    B, S, H = hidden_states.shape
    NH = num_attention_heads
    D = H // NH

    # Fused QKV projection: one (H, 3H) GEMM instead of three (H, H) GEMMs.
    W = jnp.concatenate([q_w, k_w, v_w], axis=1)     # (H, 3H)
    bias = jnp.concatenate([q_b, k_b, v_b], axis=0)  # (3H,)
    x2d = hidden_states.reshape(B * S, H)
    qkv = _linear(x2d, W, bias)                       # (B*S, 3H)

    def split_heads(m):
        return m.reshape(B, S, NH, D).transpose(0, 2, 1, 3)   # (B, NH, S, D)

    q = split_heads(qkv[:, :H])
    k = split_heads(qkv[:, H:2 * H])
    v = split_heads(qkv[:, 2 * H:3 * H])

    mask3 = attention_mask.reshape(B, 1, S).astype(jnp.float32)
    scale = 1.0 / math.sqrt(D)

    # TODO(synk): attention-prob dropout is an inference no-op here; a
    # training-mode kernel would use pltpu.prng_seed / stateful_bernoulli.
    ctx = _attention(q, k, v, mask3, scale)

    return ctx.transpose(0, 2, 1, 3).reshape(B, S, H)


# ---------------------------------------------------------------------------
# Test
# ---------------------------------------------------------------------------
if __name__ == "__main__":
    B, S, H, NH = 2, 8, 32, 4
    D = H // NH

    key = jax.random.PRNGKey(0)
    ks = jax.random.split(key, 8)

    hidden_states = jax.random.normal(ks[0], (B, S, H), dtype=jnp.float32)
    # Parameters in (in, out) layout, i.e. torch weight.T
    q_w = jax.random.normal(ks[1], (H, H), dtype=jnp.float32) * 0.05
    k_w = jax.random.normal(ks[2], (H, H), dtype=jnp.float32) * 0.05
    v_w = jax.random.normal(ks[3], (H, H), dtype=jnp.float32) * 0.05
    q_b = jax.random.normal(ks[4], (H,), dtype=jnp.float32) * 0.05
    k_b = jax.random.normal(ks[5], (H,), dtype=jnp.float32) * 0.05
    v_b = jax.random.normal(ks[6], (H,), dtype=jnp.float32) * 0.05

    # BERT-style extended additive mask (B, 1, 1, S): mask out the last 2 keys
    # of the second batch element.
    mask = jnp.zeros((B, 1, 1, S), dtype=jnp.float32)
    mask = mask.at[1, 0, 0, -2:].set(-10000.0)

    out = bert_self_attention(hidden_states, mask,
                              q_w, q_b, k_w, k_b, v_w, v_b, NH)
    jax.block_until_ready(out)

    # Pure-JAX reference (mirrors the PyTorch forward), full-precision matmuls.
    def ref_fn(x, m4):
        hp = lax.Precision.HIGHEST
        q = (jnp.dot(x, q_w, precision=hp) + q_b).reshape(B, S, NH, D)
        k = (jnp.dot(x, k_w, precision=hp) + k_b).reshape(B, S, NH, D)
        v = (jnp.dot(x, v_w, precision=hp) + v_b).reshape(B, S, NH, D)
        q, k, v = (t.transpose(0, 2, 1, 3) for t in (q, k, v))
        s = jnp.einsum("bhqd,bhkd->bhqk", q, k, precision=hp) / math.sqrt(D)
        p = jax.nn.softmax(s + m4, axis=-1)
        c = jnp.einsum("bhqk,bhkd->bhqd", p, v, precision=hp)
        return c.transpose(0, 2, 1, 3).reshape(B, S, H)

    ref = ref_fn(hidden_states, mask)

    assert out.shape == (B, S, H)
    err = float(jnp.max(jnp.abs(out - ref)))
    assert jnp.allclose(out, ref, atol=1e-4, rtol=1e-4), err

    print("KERNEL_OK")
</pallas_src>

<mosaic_0001>
module attributes {stable_mosaic.version = 11 : i64} {
  func.func @_linear_kernel(%arg0: i32, %arg1: i32, %arg2: memref<16x32xf32, #tpu.memory_space<vmem>>, %arg3: memref<32x128xf32, #tpu.memory_space<vmem>>, %arg4: memref<1x128xf32, #tpu.memory_space<vmem>>, %arg5: memref<16x128xf32, #tpu.memory_space<vmem>>) attributes {dimension_semantics = [#tpu.dimension_semantics<parallel>, #tpu.dimension_semantics<parallel>], iteration_bounds = array<i64: 1, 1>, scalar_prefetch = 0 : i64, scratch_operands = 0 : i64, tpu.core_type = #tpu.core_type<tc>, window_params = [{transform_indices = @transform_0, window_bounds = array<i64: 16, 32>}, {transform_indices = @transform_1, window_bounds = array<i64: 32, 128>}, {transform_indices = @transform_2, window_bounds = array<i64: 1, 128>}, {transform_indices = @transform_3, window_bounds = array<i64: 16, 128>}]} {
    %c0 = arith.constant 0 : index
    %c0_0 = arith.constant 0 : index
    %0 = vector.load %arg2[%c0, %c0_0] : memref<16x32xf32, #tpu.memory_space<vmem>>, vector<16x32xf32>
    %c0_1 = arith.constant 0 : index
    %c0_2 = arith.constant 0 : index
    %1 = vector.load %arg3[%c0_1, %c0_2] : memref<32x128xf32, #tpu.memory_space<vmem>>, vector<32x128xf32>
    %cst = arith.constant dense<0.000000e+00> : vector<16x128xf32>
    %2 = tpu.matmul %0, %1, %cst {dimension_numbers = #tpu.dot_dimension_numbers<[1], [0], [0], [1], [0, 0, 1, 1], [], []>} : vector<16x32xf32>, vector<32x128xf32>, vector<16x128xf32> -> vector<16x128xf32>
    %c0_3 = arith.constant 0 : index
    %c0_4 = arith.constant 0 : index
    %3 = vector.load %arg4[%c0_3, %c0_4] : memref<1x128xf32, #tpu.memory_space<vmem>>, vector<1x128xf32>
    %4 = vector.broadcast %3 : vector<1x128xf32> to vector<16x128xf32>
    %5 = arith.addf %2, %4 : vector<16x128xf32>
    %c0_5 = arith.constant 0 : index
    %c0_6 = arith.constant 0 : index
    %6 = vector.load %arg5[%c0_5, %c0_6] : memref<16x128xf32, #tpu.memory_space<vmem>>, vector<16x128xf32>
    tpu.vector_store %arg5[%c0_5, %c0_6], %5 {strides = array<i32>} : memref<16x128xf32, #tpu.memory_space<vmem>>, vector<16x128xf32>,
    return
  }
  func.func @transform_0(%arg0: i32, %arg1: i32) -> (i32, i32) {
    %c0_i32 = arith.constant 0 : i32
    %c0_i32_0 = arith.constant 0 : i32
    return %arg1, %c0_i32 : i32, i32
  }
  func.func @transform_1(%arg0: i32, %arg1: i32) -> (i32, i32) {
    %c0_i32 = arith.constant 0 : i32
    %c0_i32_0 = arith.constant 0 : i32
    return %c0_i32, %arg0 : i32, i32
  }
  func.func @transform_2(%arg0: i32, %arg1: i32) -> (i32, i32) {
    %c0_i32 = arith.constant 0 : i32
    %c0_i32_0 = arith.constant 0 : i32
    return %c0_i32, %arg0 : i32, i32
  }
  func.func @transform_3(%arg0: i32, %arg1: i32) -> (i32, i32) {
    %c0_i32 = arith.constant 0 : i32
    return %arg1, %arg0 : i32, i32
  }
}

</mosaic_0001>

<bundles_post_ra>
// kernel: tpu_custom_call.1
= control target key start
LH: loop header
LB: loop body
LE: loop exit
PB: predicated region body
PF: predicated region fallthrough
CT: control target
= control target key end

     0   :  { %8 = vsyncpa [#allocation3], 0  ;;  %s245_s0 = inlined_call_operand.hbm [shape: f32[16,32], index: 0, kind: input, shape index: {}]   ;;  %s246_s1 = inlined_call_operand.hbm [shape: f32[32,128], index: 1, kind: input, shape index: {}]   ;;  %s247_s2 = inlined_call_operand.vmem [shape: f32[1,128], index: 2, kind: input, shape index: {}]   ;;  %s248_s3 = inlined_call_operand.hbm [shape: f32[16,128], index: 3, kind: output, shape index: {}]  }
   0x1   :  { %9 = vsyncpa [#allocation6], 0 }
   0x2   :  { %10 = vsyncpa [#allocation4], 0  ;;  %s15_s14 = sshll.u32 %s245_s0, 4  ;;  %s199_s15 = smov [#allocation2]   ;;  %s16_s14 = int_to_ptr.hbm [resolvable:$true] %s15_s14 }
   0x3   :  { %s17_s16 = sshll.u32 %s199_s15, 4  ;;  %s28_s19 = sshll.u32 %s246_s1, 4  ;;  %s18_s16 = int_to_ptr.vmem [resolvable:$true] %s17_s16  ;;  %s29_s19 = int_to_ptr.hbm [resolvable:$true] %s28_s19 }
   0x4   :  { %s200_s20 = smov 128   ;;  %s201_s21 = smov 8  }
   0x5   :  { %23 = dma.hbm_to_vmem [thread:$0]  %s16_s14, 256, %s18_s16, [#allocation3], %s200_s20, %s200_s20, %s201_s21  }
   0x6   :  { %s202_s22 = smov [#allocation5]  }
   0x7   :  { %s30_s23 = sshll.u32 %s202_s22, 4  ;;  %s31_s23 = int_to_ptr.vmem [resolvable:$true] %s30_s23 }
   0x8   :  { %36 = dma.hbm_to_vmem [thread:$0]  %s29_s19, 512, %s31_s23, [#allocation6], %s200_s20, %s200_s20, %s201_s21  }
   0x9   :  { %193 = dma.done.wait [#allocation3], 256  }
   0xa   :  { %194 = vsyncadd [#allocation3], 4294967040 }
   0xb   :  { %195 = dma.done.wait [#allocation6], 512  }
   0xc   :  { %196 = vsyncadd [#allocation6], 4294966784  ;;  %v52_v0 = vld [vmem:[#allocation5 + $0x18] sm:$0xff]  ;;  %v51_v1 = vld [vmem:[#allocation5 + $0x10] sm:$0xff]  ;;  %vm57_vm0 = vcmask 261120   ;;  %s203_s24 = smov [#allocation7]  }
   0xd   :  { %76 = vmatpush.msra.mxu0 %v52_v0  ;;  %111 = vmatpush.msra.mxu1 %v52_v0  ;;  %v50_v2 = vld [vmem:[#allocation5 + $0x8] sm:$0xff]  ;;  %v49_v3 = vld [vmem:[#allocation5] sm:$0xff]  ;;  %v47_v4 = vld [vmem:[#allocation2] sm:$0xff]  ;;  %s93_s25 = sshll.u32 %s203_s24, 4  ;;  %s95_s28 = sshll.u32 %s248_s3, 4  ;;  %s94_s25 = int_to_ptr.vmem [resolvable:$true] %s93_s25  ;;  %s96_s28 = int_to_ptr.hbm [resolvable:$true] %s95_s28 }
   0xe   :  { %v48_v5 = vld [vmem:[#allocation2 + $0x8] sm:$0xff]  ;;  %v120_v6 = vld [vmem:[%s247_s2] ss:$0 sm:$0xff] }
   0xf   :  { %77 = vmatpush.msra.mxu0 %v51_v1  ;;  %112 = vmatpush.msra.mxu1 %v51_v1 }
  0x11   :  { %78 = vmatpush.msra.mxu0 %v50_v2  ;;  %113 = vmatpush.msra.mxu1 %v50_v2 }
  0x13   :  { %79 = vmatpush.msra.mxu0 %v49_v3  ;;  %114 = vmatpush.msra.mxu1 %v49_v3 }
  0x14   :  { %109 = vmatmul.msk.f32.vlgmr.msra.gmra.mxu0 %vm57_vm0, %v47_v4  ;;  %110 = vmatmul.msk.f32.vlgmr.msra.gmra.mxu1 %vm57_vm0, %v48_v5 }
  0x91   :  { %v81_v7 = vpop.f32.mrf.mxu0  ;;  %v84_v8 = vpop.f32.mrf.mxu1 }
  0x92   :  { %v82_v9 = vadd.f32 %v120_v6, %v81_v7  ;;  %v85_v10 = vadd.f32 %v120_v6, %v84_v8 }
  0x94   :  { %87 = vst [vmem:[#allocation7] sm:$0xff] %v82_v9 }
  0x95   :  { %88 = vst [vmem:[#allocation7 + $0x8] sm:$0xff] %v85_v10 }
  0x96   :  { %101 = dma.vmem_to_hbm [thread:$0]  %s94_s25, 256, %s96_s28, [#allocation4], %s200_s20, %s200_s20, %s201_s21  }
  0x97   :  { %197 = dma.done.wait [#allocation4], 256  }
  0x98   :  { %198 = vsyncadd [#allocation4], 4294967040 }
  0x99   :  { %106 = vsyncpa [#allocation3], 1 }
  0x9a   :  { %107 = vsyncpa [#allocation6], 1 }
  0x9b   :  { %108 = vsyncpa [#allocation4], 1 }

</bundles_post_ra>
